<compile_context>
chip_gen: v6e
topology: v6e:2x2x1
jax: 0.10.0
libtpu: 0.0.40
codegen_flags: <defaults>
</compile_context>

<pallas_src>
import jax
import jax.numpy as jnp
from jax.experimental import pallas as pl
from jax.experimental.pallas import tpu as pltpu


def _conv1x1_kernel(w_ref, x_ref, b_ref, mu_ref, lv_ref):
    # w: (Cout, Cin)   x: (Nb, Cin, T)   b: (Cout, 1)   mu/lv: (Nb, L, T)
    w = w_ref[...]
    b = b_ref[...]
    latent = mu_ref.shape[1]
    # Static unroll over the small per-step image batch: each iteration is a
    # plain 2-D MXU matmul with the lane (spatial) axis dense.
    for i in range(x_ref.shape[0]):
        res = jnp.dot(w, x_ref[i], preferred_element_type=jnp.float32) + b
        # Channel split done in VMEM. latent_dim is a multiple of 8 here so
        # the split lands on a sublane-tile boundary (no relayout); a
        # non-multiple-of-8 latent_dim is still correct, just costs a relayout.
        mu_ref[i] = res[:latent, :].astype(mu_ref.dtype)
        lv_ref[i] = res[latent:, :].astype(lv_ref.dtype)


def _vmem_capacity_bytes():
    try:
        return int(pltpu.get_tpu_info().vmem_capacity_bytes)
    except Exception:
        return 64 * 1024 * 1024  # conservative default (v7x per-core VMEM)


def _choose_tiling(n, hw_pad, cin, cout, dtype_bytes, vmem_cap):
    """Pick (Nb images per grid step, tile_hw lanes per grid step)."""
    # Keep double-buffered in + out tiles well under the scoped-VMEM default
    # on every generation (v7x: 32 MiB scoped / 64 MiB physical).
    vmem_budget = min(vmem_cap // 4, 16 * 1024 * 1024)

    # Lane tile: multiple of 128, divisor of hw_pad, capped at 4096 lanes.
    # HBM bandwidth saturates well before 4k lanes; the cap keeps the VMEM
    # footprint small and leaves multiple pipelined grid steps.
    tile_hw = min(hw_pad, 4096)
    tile_hw -= tile_hw % 128
    tile_hw = max(tile_hw, 128)
    while hw_pad % tile_hw != 0:
        tile_hw -= 128

    # Images per grid step: fatten tiny-HW steps to amortize the ~0.35 us
    # per-step pipeline overhead, within the VMEM budget (double-buffered
    # input tile + both output tiles).
    per_img = (cin + cout) * tile_hw * dtype_bytes
    nb_vmem = max(1, vmem_budget // (2 * per_img))
    nb_target = max(1, (1 << 20) // per_img)      # aim for ~1 MiB per step
    nb = max(1, min(n, nb_vmem, nb_target))
    while n % nb != 0:
        nb -= 1

    # Keep >= 2 grid points when possible: v7x shards "parallel" grid axes
    # across its two TensorCores, and >= 2 steps lets the pipeline overlap.
    def steps(nb_, thw_):
        return (n // nb_) * (hw_pad // thw_)

    while steps(nb, tile_hw) < 2 and nb > 1:
        nb -= 1
        while n % nb != 0:
            nb -= 1
    if steps(nb, tile_hw) < 2 and tile_hw > 128:
        half = max(128, (tile_hw // 2) - ((tile_hw // 2) % 128))
        while half > 128 and hw_pad % half != 0:
            half -= 128
        if hw_pad % half == 0:
            tile_hw = half
    return nb, tile_hw


def posterior_net_forward(x_nchw, weight, bias, latent_dim):
    """Forward pass of PosteriorNet.

    Args:
      x_nchw: (N, Cin, H, W) float32
      weight: (Cout, Cin, 1, 1) float32  -- PyTorch Conv2d weight layout
      bias:   (Cout,) float32
      latent_dim: int, Cout == 2 * latent_dim

    Returns:
      (mu, logvar), each (N, latent_dim, H, W)
    """
    N, Cin, H, W = x_nchw.shape
    Cout = weight.shape[0]
    assert Cout == 2 * latent_dim

    HW = H * W
    HW_pad = ((HW + 127) // 128) * 128      # lane-dense stores on all chips

    # Free views (no transpose / HBM shuffle); pad spatial axis if needed.
    x3 = x_nchw.reshape(N, Cin, HW)
    if HW_pad != HW:
        x3 = jnp.pad(x3, ((0, 0), (0, 0), (0, HW_pad - HW)))
    w_mat = weight[:, :, 0, 0]              # (Cout, Cin)
    b_col = bias.reshape(Cout, 1)           # broadcasts over the lane axis

    vmem_cap = _vmem_capacity_bytes()
    Nb, tile_hw = _choose_tiling(
        N, HW_pad, Cin, Cout, x_nchw.dtype.itemsize, vmem_cap
    )
    assert N % Nb == 0 and HW_pad % tile_hw == 0, (Nb, tile_hw)
    grid = (N // Nb, HW_pad // tile_hw)

    out_struct = jax.ShapeDtypeStruct((N, latent_dim, HW_pad), x_nchw.dtype)
    mu3, lv3 = pl.pallas_call(
        _conv1x1_kernel,
        out_shape=(out_struct, out_struct),
        grid_spec=pltpu.PrefetchScalarGridSpec(
            num_scalar_prefetch=0,
            grid=grid,
            in_specs=[
                # Weight and bias: tiny, pinned to a single block.
                pl.BlockSpec((Cout, Cin), lambda n, t: (0, 0)),
                # Activations: Nb images, all channels, one spatial tile.
                pl.BlockSpec((Nb, Cin, tile_hw), lambda n, t: (n, 0, t)),
                pl.BlockSpec((Cout, 1), lambda n, t: (0, 0)),
            ],
            out_specs=[
                pl.BlockSpec((Nb, latent_dim, tile_hw), lambda n, t: (n, 0, t)),
                pl.BlockSpec((Nb, latent_dim, tile_hw), lambda n, t: (n, 0, t)),
            ],
        ),
        compiler_params=pltpu.CompilerParams(
            dimension_semantics=("parallel", "parallel"),
            vmem_limit_bytes=int(min(vmem_cap // 2, 64 * 1024 * 1024)),
        ),
    )(w_mat, x3, b_col)

    if HW_pad != HW:
        mu3 = mu3[:, :, :HW]
        lv3 = lv3[:, :, :HW]
    mu = mu3.reshape(N, latent_dim, H, W)
    logvar = lv3.reshape(N, latent_dim, H, W)
    return mu, logvar


if __name__ == "__main__":
    # Small, deterministic example consistent with the module.
    N, Cin, H, W = 2, 4, 16, 16
    latent_dim = 8
    Cout = 2 * latent_dim

    key = jax.random.PRNGKey(0)
    kx, kw, kb = jax.random.split(key, 3)

    x = jax.random.normal(kx, (N, Cin, H, W), dtype=jnp.float32)
    # Deterministic synthetic Conv2d parameters (Kaiming-uniform-like bounds).
    fan_in = Cin  # kernel_size = 1
    bound = 1.0 / jnp.sqrt(fan_in)
    weight = jax.random.uniform(
        kw, (Cout, Cin, 1, 1), minval=-bound, maxval=bound, dtype=jnp.float32
    )
    bias = jax.random.uniform(
        kb, (Cout,), minval=-bound, maxval=bound, dtype=jnp.float32
    )

    mu, logvar = posterior_net_forward(x, weight, bias, latent_dim)
    jax.block_until_ready((mu, logvar))

    # Reference check in plain JAX (same math as nn.Conv2d with kernel_size=1).
    ref = (
        jnp.einsum("nchw,oc->nohw", x, weight[:, :, 0, 0])
        + bias[None, :, None, None]
    )
    assert mu.shape == (N, latent_dim, H, W)
    assert logvar.shape == (N, latent_dim, H, W)
    assert jnp.allclose(mu, ref[:, :latent_dim], atol=1e-5)
    assert jnp.allclose(logvar, ref[:, latent_dim:], atol=1e-5)

    # Also exercise the HW % 128 != 0 padding path (H = W = 10 -> HW = 100).
    H2 = W2 = 10
    x2 = jax.random.normal(kx, (N, Cin, H2, W2), dtype=jnp.float32)
    mu2, lv2 = posterior_net_forward(x2, weight, bias, latent_dim)
    jax.block_until_ready((mu2, lv2))
    ref2 = (
        jnp.einsum("nchw,oc->nohw", x2, weight[:, :, 0, 0])
        + bias[None, :, None, None]
    )
    assert jnp.allclose(mu2, ref2[:, :latent_dim], atol=1e-5)
    assert jnp.allclose(lv2, ref2[:, latent_dim:], atol=1e-5)

    print("KERNEL_OK")
</pallas_src>

<mosaic_0001>
module attributes {stable_mosaic.version = 11 : i64} {
  func.func @_conv1x1_kernel(%arg0: i32, %arg1: i32, %arg2: memref<16x4xf32, #tpu.memory_space<vmem>>, %arg3: memref<1x4x256xf32, #tpu.memory_space<vmem>>, %arg4: memref<16x1xf32, #tpu.memory_space<vmem>>, %arg5: memref<1x8x256xf32, #tpu.memory_space<vmem>>, %arg6: memref<1x8x256xf32, #tpu.memory_space<vmem>>) attributes {dimension_semantics = [#tpu.dimension_semantics<parallel>, #tpu.dimension_semantics<parallel>], iteration_bounds = array<i64: 2, 1>, scalar_prefetch = 0 : i64, scratch_operands = 0 : i64, tpu.core_type = #tpu.core_type<tc>, window_params = [{pipeline_mode = #tpu.pipeline_mode<synchronous>, transform_indices = @transform_0, window_bounds = array<i64: 16, 4>}, {transform_indices = @transform_1, window_bounds = array<i64: 1, 4, 256>}, {pipeline_mode = #tpu.pipeline_mode<synchronous>, transform_indices = @transform_2, window_bounds = array<i64: 16, 1>}, {transform_indices = @transform_3, window_bounds = array<i64: 1, 8, 256>}, {transform_indices = @transform_4, window_bounds = array<i64: 1, 8, 256>}]} {
    %c0 = arith.constant 0 : index
    %c0_0 = arith.constant 0 : index
    %0 = vector.load %arg2[%c0, %c0_0] : memref<16x4xf32, #tpu.memory_space<vmem>>, vector<16x4xf32>
    %c0_1 = arith.constant 0 : index
    %c0_2 = arith.constant 0 : index
    %1 = vector.load %arg4[%c0_1, %c0_2] : memref<16x1xf32, #tpu.memory_space<vmem>>, vector<16x1xf32>
    %c0_3 = arith.constant 0 : index
    %c0_4 = arith.constant 0 : index
    %c0_5 = arith.constant 0 : index
    %2 = vector.load %arg3[%c0_3, %c0_4, %c0_5] : memref<1x4x256xf32, #tpu.memory_space<vmem>>, vector<1x4x256xf32>
    %3 = vector.shape_cast %2 : vector<1x4x256xf32> to vector<4x256xf32>
    %cst = arith.constant dense<0.000000e+00> : vector<16x256xf32>
    %4 = tpu.matmul %0, %3, %cst {dimension_numbers = #tpu.dot_dimension_numbers<[1], [0], [0], [1], [0, 0, 1, 1], [], []>} : vector<16x4xf32>, vector<4x256xf32>, vector<16x256xf32> -> vector<16x256xf32>
    %5 = vector.broadcast %1 : vector<16x1xf32> to vector<16x256xf32>
    %6 = arith.addf %4, %5 : vector<16x256xf32>
    %7 = vector.extract_strided_slice %6 {offsets = [0, 0], sizes = [8, 256], strides = [1, 1]} : vector<16x256xf32> to vector<8x256xf32>
    %c0_6 = arith.constant 0 : index
    %c0_7 = arith.constant 0 : index
    %c0_8 = arith.constant 0 : index
    %8 = vector.load %arg5[%c0_6, %c0_7, %c0_8] : memref<1x8x256xf32, #tpu.memory_space<vmem>>, vector<1x8x256xf32>
    %9 = vector.shape_cast %8 : vector<1x8x256xf32> to vector<8x256xf32>
    %10 = vector.shape_cast %7 : vector<8x256xf32> to vector<1x8x256xf32>
    tpu.vector_store %arg5[%c0_6, %c0_7, %c0_8], %10 {strides = array<i32>} : memref<1x8x256xf32, #tpu.memory_space<vmem>>, vector<1x8x256xf32>,
    %11 = vector.extract_strided_slice %6 {offsets = [8, 0], sizes = [8, 256], strides = [1, 1]} : vector<16x256xf32> to vector<8x256xf32>
    %c0_9 = arith.constant 0 : index
    %c0_10 = arith.constant 0 : index
    %c0_11 = arith.constant 0 : index
    %12 = vector.load %arg6[%c0_9, %c0_10, %c0_11] : memref<1x8x256xf32, #tpu.memory_space<vmem>>, vector<1x8x256xf32>
    %13 = vector.shape_cast %12 : vector<1x8x256xf32> to vector<8x256xf32>
    %14 = vector.shape_cast %11 : vector<8x256xf32> to vector<1x8x256xf32>
    tpu.vector_store %arg6[%c0_9, %c0_10, %c0_11], %14 {strides = array<i32>} : memref<1x8x256xf32, #tpu.memory_space<vmem>>, vector<1x8x256xf32>,
    return
  }
  func.func @transform_0(%arg0: i32, %arg1: i32) -> (i32, i32) {
    %c0_i32 = arith.constant 0 : i32
    %c0_i32_0 = arith.constant 0 : i32
    %c0_i32_1 = arith.constant 0 : i32
    return %c0_i32, %c0_i32_0 : i32, i32
  }
  func.func @transform_1(%arg0: i32, %arg1: i32) -> (i32, i32, i32) {
    %c0_i32 = arith.constant 0 : i32
    %c0_i32_0 = arith.constant 0 : i32
    return %arg0, %c0_i32, %arg1 : i32, i32, i32
  }
  func.func @transform_2(%arg0: i32, %arg1: i32) -> (i32, i32) {
    %c0_i32 = arith.constant 0 : i32
    %c0_i32_0 = arith.constant 0 : i32
    %c0_i32_1 = arith.constant 0 : i32
    return %c0_i32, %c0_i32_0 : i32, i32
  }
  func.func @transform_3(%arg0: i32, %arg1: i32) -> (i32, i32, i32) {
    %c0_i32 = arith.constant 0 : i32
    %c0_i32_0 = arith.constant 0 : i32
    return %arg0, %c0_i32, %arg1 : i32, i32, i32
  }
  func.func @transform_4(%arg0: i32, %arg1: i32) -> (i32, i32, i32) {
    %c0_i32 = arith.constant 0 : i32
    %c0_i32_0 = arith.constant 0 : i32
    return %arg0, %c0_i32, %arg1 : i32, i32, i32
  }
}

</mosaic_0001>

<bundles_post_ra>
// kernel: tpu_custom_call.1
= control target key start
LH: loop header
LB: loop body
LE: loop exit
PB: predicated region body
PF: predicated region fallthrough
CT: control target
= control target key end

     0   :  { %10 = vsyncpa [#allocation3], 0  ;;  %s882_s0 = inlined_call_operand.vmem [shape: f32[16,4], index: 0, kind: input, shape index: {}]   ;;  %s883_s1 = inlined_call_operand.vmem [shape: f32[2,4,256], index: 1, kind: input, shape index: {}]   ;;  %s884_s2 = inlined_call_operand.vmem [shape: f32[16,1], index: 2, kind: input, shape index: {}]   ;;  %s885_s3 = inlined_call_operand.hbm [shape: f32[2,8,256], index: 3, kind: output, shape index: {0}]   ;;  %s886_s4 = inlined_call_operand.hbm [shape: f32[2,8,256], index: 4, kind: output, shape index: {1}]  }
   0x1   :  { %12 = vsyncpa [#allocation3 + $0x1], 0 }
   0x2   :  { %13 = vsyncpa [#allocation5], 0 }
   0x3   :  { %15 = vsyncpa [#allocation5 + $0x1], 0  ;;  %s727_s15 = smov 0   ;;  %s729_s16 = smov 0  }
   0x4   :  { %s731_s17 = smov 0   ;;  %s733_s18 = smov 0  }
   0x5   :  { %s735_s19 = smov 0   ;;  %s737_s20 = smov 0  }
   0x6 LB: > { %s500_s21 = sadd.s32 4294967295, %s696_s20   ;;  %s501_s22 = sadd.s32 4294967294, %s696_s20   ;;  %s696_s20 = sphi %s737_s20, %s21_s20   ;;  %s692_s19 = sphi %s735_s19, %s893_s19   ;;  %s688_s18 = sphi %s733_s18, %s892_s18   ;;  %s684_s17 = sphi %s731_s17, %s891_s17   ;;  %s680_s16 = sphi %s729_s16, %s890_s16   ;;  %s676_s15 = sphi %s727_s15, %s889_s15  }
   0x7   : > { %s33_s23 = sadd.s32 1, %s692_s19  ;;  %s112_s24 = sadd.s32 1, %s684_s17 }
   0x8   : > { %p35_p0 = scmp.ge.s32.totalorder %s33_s23, 2  ;;  %p122_p1 = scmp.ne.s32.totalorder %s684_s17, %s680_s16 }
   0x9   : > { %p123_p2 = scmp.eq.s32.totalorder %s500_s21, 1  ;;  %p128_p3 = scmp.ne.s32.totalorder %s680_s16, %s676_s15 }
   0xa   : > { %s895_s23 = smov (%p35_p0, %s33_s23), 0  ;;  %p129_p5 = scmp.eq.s32.totalorder %s501_s22, 1 }
   0xb   : > { %p767_p4 = por %p123_p2, %p122_p1  ;;  %s107_s26 = ssub.s32 %s692_s19, %s895_s23 }
   0xc   : > { %p504_p6 = scmp.ge.s32.totalorder %s696_s20, 1  ;;  %p110_p7 = scmp.eq.s32.totalorder %s107_s26, 0 }
   0xd   : > { %p774_p8 = por %p129_p5, %p128_p3  ;;  %p194_p9 = scmp.lt.s32.totalorder %s696_s20, 3 }
   0xe   : > { %s780_s28 = scalar_select %p110_p7, %s684_s17, %s112_s24  }
   0xf   : > { %p195_p10 = pnand %p504_p6, %p194_p9 }
  0x10   : > { %p230_p11 = scmp.lt.s32.totalorder (!%p195_p10), %s688_s18, 1  ;;  %s800_s22 = sand.u32 (!%p195_p10), 1, %s680_s16  }
  0x11   : > { %198 = sbr.rel (%p195_p10) target bundleno = 264 (0x108), region = 32  ;;  %s505_s24 = sshll.u32 (!%p195_p10), %s800_s22, 4 }
  0x12   : > { %s522_s26 = sshll.u32 (!%p195_p10), %s688_s18, 8  ;;  %s221_s29 = scalar_lea.vmem (!%p195_p10), [#allocation2], %s505_s24 }
  0x13   : > { %s373_s30 = sshll.u32 (!%p195_p10), %s221_s29, 4  ;;  %s807_s9 = scalar_lea.hbm (!%p195_p10), %s885_s3, %s522_s26  ;;  %s809_s30 = int_to_ptr.vmem [resolvable:$true] %s373_s30 }
  0x14   : > { %s352_s12 = scalar_lea.sflag (!%p195_p10), [#allocation3], %s800_s22  ;;  %s590_s13 = scalar_lea.vmem (!%p195_p10), %s809_s30, 256 }
  0x15   : > { %p591_p12 = scmp.ne.s32.totalorder (!%p195_p10), %s809_s30, %s590_s13  ;;  %s700_s14 = smov (!%p195_p10), [#allocation2]  }
  0x16   : > { %v698_v0 = vmov 0.0   ;;  %v243_v1 = vld [vmem:[%s884_s2] sm:$0xff]  ;;  %s231_s5 = scalar_select %p230_p11, %s688_s18, 1  ;;  %v699_v2 = vmov 0   ;;  %v244_v3 = vld [vmem:[%s884_s2 + $0x8] sm:$0xff]  ;;  %vm265_vm0 = vcmask 1043456  }
  0x17   : > { %334 = vmatprep.mubr.f32.mxu0 %v698_v0  ;;  %340 = vmatprep.mubr.f32.mxu1 %v698_v0  ;;  %v241_v6 = vld [vmem:[%s882_s0] sm:$0xff]  ;;  %vm258_vm1 = vcmask 31744   ;;  %v242_v7 = vld [vmem:[%s882_s0 + $0x8] sm:$0xff]  ;;  %p592_p13 = pnand %p591_p12, %p767_p4  ;;  %s594_s21 = sshll.u32 %s700_s14, 4  ;;  %s595_s21 = int_to_ptr.vmem [resolvable:$false] %s594_s21 }
  0x18   : > { %588 = vset.pattern.permute.xlu0 %v699_v2  ;;  %s521_s6 = sshll.u32 %s231_s5, 3  ;;  %s228_s5 = scalar_lea.vmem [#allocation4], %s505_s24 }
  0x19   : > { %248 = vperm.xlu0 %588, %v243_v1   ;;  %s237_s11 = scalar_lea.vmem %s883_s1, %s521_s6  ;;  %s389_s6 = sshll.u32 %s228_s5, 4  ;;  %s816_s6 = int_to_ptr.vmem [resolvable:$true] %s389_s6 }
  0x1a   : > { %v245_v4 = vld [vmem:[%s237_s11] sm:$0xff]  ;;  %s814_s11 = scalar_lea.hbm %s886_s4, %s522_s26  ;;  %p593_p0 = pneg %p592_p13 }
  0x1b   : > { %v257_v5 = vcombine.high %v245_v4, %v245_v4  ;;  %s596_s24 = scalar_lea.vmem %s595_s21, 512  ;;  %p597_p1 = scmp.lt.s32.totalorder %s809_s30, %s595_s21 }
  0x1c   : > { %p598_p2 = scmp.lt.s32.totalorder %s596_s24, %s590_s13 }
  0x1d   : > { %253 = vperm.xlu0 %588, %v244_v3   ;;  %509 = vmatprep.subr.msk.mxu0 %vm265_vm0, %v257_v5 }
  0x1e   : > { %524 = vmatprep.subr.msk.mxu1 %vm265_vm0, %v257_v5  ;;  %510 = vmatpush1.msk.msra.mxu0 %vm265_vm0, %v245_v4  ;;  %p599_p3 = por %p598_p2, %p597_p1 }
  0x1f   : > { %525 = vmatpush1.msk.msra.mxu1 %vm265_vm0, %v245_v4  ;;  %511 = vmatmul.mubr.msk.f32.vlgmr.msra.gmra.mxu0 %vm258_vm1, %v241_v6 }
  0x20   : > { %512 = vmatmul.mubr.msk.f32.vlgmr.msra.gmra.mxu1 %vm258_vm1, %v242_v7  ;;  %p600_p5 = pnand %p599_p3, %p593_p0 }
  0x94   : > { %v249_v8 = vpop.permute.xlu0 %248 }
  0x98   : > { %v254_v9 = vpop.permute.xlu0 %253 }
  0xdf   : > { %v336_v10 = vpop.f32.mrf.mxu0 }
  0xe0   : > { %v342_v11 = vpop.f32.mrf.mxu1  ;;  %v337_v12 = vadd.f32 %v336_v10, %v249_v8 }
  0xe1   : > { %v343_v13 = vadd.f32 %v342_v11, %v254_v9  ;;  %v338_v14 = vpop.f32.mrf.mxu0 }
  0xe2   : > { %v344_v15 = vpop.f32.mrf.mxu1  ;;  %347 = vst [vmem:[%s221_s29] sm:$0xff] %v337_v12  ;;  %v339_v16 = vadd.f32 %v338_v14, %v249_v8 }
  0xe3   : > { %349 = vst [vmem:[%s228_s5] sm:$0xff] %v343_v13  ;;  %v345_v17 = vadd.f32 %v344_v15, %v254_v9 }
  0xe4   : > { %348 = vst [vmem:[%s221_s29 + $0x8] sm:$0xff] %v339_v16 }
  0xe5   : > { %350 = vst [vmem:[%s228_s5 + $0x8] sm:$0xff] %v345_v17 }
  0xe6   : > { %603 = shalt.err (!%p600_p5)
}
  0xe7   : > { %s604_s26 = scalar_lea.hbm %s807_s9, 256  ;;  %s608_s7 = scalar_lea.hbm %s885_s3, 512 }
  0xe8   : > { %p605_p6 = scmp.ne.s32.totalorder %s807_s9, %s604_s26  ;;  %p609_p10 = scmp.lt.s32.totalorder %s807_s9, %s885_s3 }
  0xe9   : > { %p610_p11 = scmp.lt.s32.totalorder %s608_s7, %s604_s26 }
  0xea   : > { %p606_p7 = pnand %p605_p6, %p767_p4 }
  0xeb   : > { %p611_p12 = por %p610_p11, %p609_p10 }
  0xec   : > { %p607_p9 = pneg %p606_p7 }
  0xee   : > { %p612_p13 = pnand %p611_p12, %p607_p9 }
  0xf0   : > { %615 = shalt.err (!%p612_p13)
}
  0xf1   : > { %526 = dma.vmem_to_hbm [thread:$0]  (%p767_p4), %s809_s30, 256, %s807_s9, %s352_s12  }
  0xf2   : > { %s357_s10 = scalar_lea.sflag [#allocation5], %s800_s22  ;;  %s616_s13 = scalar_lea.vmem %s816_s6, 256 }
  0xf3   : > { %p617_p0 = scmp.ne.s32.totalorder %s816_s6, %s616_s13  ;;  %s701_s14 = smov [#allocation4]  }
  0xf4   : > { %s620_s21 = sshll.u32 %s701_s14, 4  ;;  %s621_s21 = int_to_ptr.vmem [resolvable:$false] %s620_s21 }
  0xf5   : > { %p618_p1 = pnand %p617_p0, %p767_p4  ;;  %s622_s24 = scalar_lea.vmem %s621_s21, 512 }
  0xf6   : > { %p623_p3 = scmp.lt.s32.totalorder %s816_s6, %s621_s21  ;;  %p624_p5 = scmp.lt.s32.totalorder %s622_s24, %s616_s13 }
  0xf7   : > { %p619_p2 = pneg %p618_p1 }
  0xf8   : > { %p625_p6 = por %p624_p5, %p623_p3 }
  0xfa   : > { %p626_p7 = pnand %p625_p6, %p619_p2 }
  0xfc   : > { %629 = shalt.err (!%p626_p7)
}
  0xfd   : > { %s630_s30 = scalar_lea.hbm %s814_s11, 256  ;;  %s634_s12 = scalar_lea.hbm %s886_s4, 512 }
  0xfe   : > { %p631_p9 = scmp.ne.s32.totalorder %s814_s11, %s630_s30  ;;  %p635_p12 = scmp.lt.s32.totalorder %s814_s11, %s886_s4 }
  0xff   : > { %p636_p13 = scmp.lt.s32.totalorder %s634_s12, %s630_s30 }
 0x100   : > { %p632_p10 = pnand %p631_p9, %p767_p4 }
 0x101   : > { %p637_p0 = por %p636_p13, %p635_p12 }
 0x102   : > { %p633_p11 = pneg %p632_p10 }
 0x104   : > { %p638_p1 = pnand %p637_p0, %p633_p11 }
 0x106   : > { %641 = shalt.err (!%p638_p1)
}
 0x107   : > { %527 = dma.vmem_to_hbm [thread:$0]  (%p767_p4), %s816_s6, 256, %s814_s11, %s357_s10  }
 0x108 PF: > { %p537_p2 = scmp.ge.s32.totalorder %s696_s20, 2  ;;  %s401_s5 = sand.u32 1, %s676_s15  }
 0x109   : > { %s402_s7 = scalar_lea.sflag [#allocation3], %s401_s5 }
 0x10a   : > { %p531_p3 = pnand %p537_p2, %p774_p8 }
 0x10c   : > { %p532_p5 = pneg %p531_p3 }
 0x10e   : > { %667 = dma.done.wait (%p532_p5), %s402_s7, 256  }
 0x10f   : > { %669 = vsyncadd (%p532_p5), %s402_s7, 4294967040  ;;  %s411_s8 = scalar_lea.sflag [#allocation5], %s401_s5 }
 0x110   : > { %671 = dma.done.wait (%p532_p5), %s411_s8, 256  }
 0x111   : > { %673 = vsyncadd (%p532_p5), %s411_s8, 4294967040  ;;  %s21_s20 = sadd.s32 1, %s696_s20   ;;  %s889_s15 = smov %s680_s16 }
 0x112   : > { %p18_p6 = scmp.ge.s32.totalorder %s21_s20, 4   ;;  %s890_s16 = smov %s684_s17 }
 0x113   : > { %s891_s17 = smov %s780_s28  ;;  %s892_s18 = smov %s692_s19 }
 0x114   : > { %s893_s19 = smov %s895_s23  ;;  %20 = sbr.rel (!%p18_p6) target bundleno = 6 (0x6), region = 84 }
 0x119   :  { %416 = vsyncpa [#allocation3], 1 }
 0x11a   :  { %418 = vsyncpa [#allocation3 + $0x1], 1 }
 0x11b   :  { %419 = vsyncpa [#allocation5], 1 }
 0x11c   :  { %421 = vsyncpa [#allocation5 + $0x1], 1 }

</bundles_post_ra>
